<compile_context>
chip_gen: v7x
topology: tpu7x:2x2x1
jax: 0.10.0
libtpu: 0.0.40
codegen_flags: <defaults>
</compile_context>

<pallas_src>
import jax
import jax.numpy as jnp
from jax.experimental import pallas as pl
from jax.experimental.pallas import tpu as pltpu


# ----------------------------------------------------------------------------
# HBM -> HBM direct DMA copy (primary materialized path)
# ----------------------------------------------------------------------------
def _dma_copy_kernel(x_hbm_ref, o_hbm_ref, sem):
    cp = pltpu.make_async_copy(x_hbm_ref, o_hbm_ref, sem)
    cp.start()
    cp.wait()


def _identity_copy_dma(x):
    """Materialized identity copy as a single HBM->HBM DMA."""
    if x.size == 0:
        return x
    itemsize = jnp.dtype(x.dtype).itemsize
    return pl.pallas_call(
        _dma_copy_kernel,
        out_shape=jax.ShapeDtypeStruct(x.shape, x.dtype),
        in_specs=[pl.BlockSpec(memory_space=pl.ANY)],
        out_specs=pl.BlockSpec(memory_space=pl.ANY),
        scratch_shapes=[pltpu.SemaphoreType.DMA(())],
        compiler_params=pltpu.CompilerParams(has_side_effects=True),
        cost_estimate=pl.CostEstimate(
            flops=0, transcendentals=0, bytes_accessed=2 * x.size * itemsize
        ),
    )(x)


# ----------------------------------------------------------------------------
# Tiled VMEM copy (optional alternative; fixed per the perf review)
# ----------------------------------------------------------------------------
def _copy_kernel(x_ref, o_ref):
    o_ref[...] = x_ref[...]


def _lane_dense_factorization(total):
    """Factor `total` as rows*cols with cols a large multiple of 128."""
    for cols in (4096, 2048, 1024, 512, 256, 128):
        if total % cols == 0 and total // cols >= 8:
            return total // cols, cols
    for cols in (4096, 2048, 1024, 512, 256, 128):
        if total % cols == 0:
            return total // cols, cols
    return None


def _tile_bytes_for_device():
    """Per-generation tile size: 2 MiB (v5e) / 4 MiB (v6e) / 8 MiB (v7x)."""
    try:
        kind = jax.devices()[0].device_kind.lower()
    except Exception:  # pragma: no cover - defensive
        kind = ""
    if "v5" in kind:
        return 2 * 1024 * 1024
    if "v7" in kind:
        return 8 * 1024 * 1024
    return 4 * 1024 * 1024


def _identity_copy_tiled(x):
    """Materialized identity copy via a lane-dense tiled VMEM kernel."""
    orig_shape = x.shape
    dtype = x.dtype
    total = x.size

    if total == 0:
        return x

    fact = _lane_dense_factorization(total)
    if fact is None:
        # Element count not a multiple of 128: the HBM->HBM DMA has no lane
        # or VMEM-size constraint, so use it instead of a whole-array block.
        return _identity_copy_dma(x)

    rows, cols = fact
    x2d = x.reshape(rows, cols)

    itemsize = jnp.dtype(dtype).itemsize
    packing = max(1, 4 // itemsize)      # 1 for f32, 2 for bf16, 4 for int8
    sublane_mult = 8 * packing

    tile_bytes = _tile_bytes_for_device()
    block_cols = cols                    # full-row blocks -> contiguous DMAs
    rows_per_tile = max(
        sublane_mult,
        (tile_bytes // (block_cols * itemsize)) // sublane_mult * sublane_mult,
    )
    block_rows = rows if rows <= rows_per_tile else rows_per_tile

    # 2 arrays x 2 pipeline buffers per tile, plus headroom; cap well under
    # v7x's 64 MiB physical VMEM.
    tile_footprint = block_rows * block_cols * itemsize
    vmem_limit = min(48 * 1024 * 1024, 4 * tile_footprint + 8 * 1024 * 1024)

    grid = (pl.cdiv(rows, block_rows),)  # 1-D grid over contiguous rows

    out2d = pl.pallas_call(
        _copy_kernel,
        out_shape=jax.ShapeDtypeStruct((rows, cols), dtype),
        grid=grid,
        in_specs=[pl.BlockSpec((block_rows, block_cols), lambda i: (i, 0))],
        out_specs=pl.BlockSpec((block_rows, block_cols), lambda i: (i, 0)),
        compiler_params=pltpu.CompilerParams(
            dimension_semantics=("parallel",),
            vmem_limit_bytes=vmem_limit,
        ),
        cost_estimate=pl.CostEstimate(
            flops=0, transcendentals=0, bytes_accessed=2 * total * itemsize
        ),
    )(x2d)
    return out2d.reshape(orig_shape)


# ----------------------------------------------------------------------------
# Module-equivalent API
# ----------------------------------------------------------------------------
def identity_first_stage_forward(x, *args, materialize=False, method="dma", **kwargs):
    """IdentityFirstStage.forward: identity.

    Default returns `x` directly (zero-copy; optimal on every generation).
    materialize=True produces a distinct output buffer:
      method="dma"   -> single HBM->HBM DMA (default, fastest, any shape)
      method="tiled" -> lane-dense tiled VMEM copy kernel
    """
    if not materialize:
        return x
    if method == "tiled":
        return _identity_copy_tiled(x)
    return _identity_copy_dma(x)


def identity_first_stage_encode(x, *args, **kwargs):
    return x


def identity_first_stage_decode(x, *args, **kwargs):
    return x


def identity_first_stage_quantize(x, *args, vq_interface=False, **kwargs):
    # Python-level glue only (tuple wrapping), no tensor compute.
    if vq_interface:
        return x, None, [None, None, None]
    return x


if __name__ == "__main__":
    key = jax.random.PRNGKey(0)
    # NCHW input consistent with the module's use in an autoencoder stack.
    x = jax.random.normal(key, (2, 4, 16, 16), dtype=jnp.float32)

    # Primary (zero-copy) identity path.
    y0 = jax.block_until_ready(identity_first_stage_forward(x))
    assert y0.shape == x.shape and y0.dtype == x.dtype
    assert bool(jnp.all(y0 == x))

    # Materialized copy via HBM->HBM DMA (primary materialized path).
    y1 = jax.block_until_ready(identity_first_stage_forward(x, materialize=True))
    assert y1.shape == x.shape and y1.dtype == x.dtype
    assert bool(jnp.all(y1 == x))

    # Odd element count (not a multiple of 128): DMA path has no constraint.
    x_odd = jax.random.normal(jax.random.PRNGKey(2), (3, 5, 7), dtype=jnp.float32)
    y_odd = jax.block_until_ready(identity_first_stage_forward(x_odd, materialize=True))
    assert y_odd.shape == x_odd.shape and bool(jnp.all(y_odd == x_odd))

    # Tiled VMEM path (full-row lane-dense blocks, 1-D parallel grid).
    x2 = jax.random.normal(jax.random.PRNGKey(1), (2, 4, 64, 64), dtype=jnp.float32)
    y2 = jax.block_until_ready(
        identity_first_stage_forward(x2, materialize=True, method="tiled")
    )
    assert y2.shape == x2.shape and bool(jnp.all(y2 == x2))

    # bf16 through the tiled path (packed sublane rounding).
    x3 = jax.random.normal(jax.random.PRNGKey(3), (2, 4, 16, 16), dtype=jnp.bfloat16)
    y3 = jax.block_until_ready(
        identity_first_stage_forward(x3, materialize=True, method="tiled")
    )
    assert y3.dtype == jnp.bfloat16 and bool(jnp.all(y3 == x3))

    # encode / decode / quantize are identity (+ optional tuple wrapping).
    assert identity_first_stage_encode(x) is x
    assert identity_first_stage_decode(x) is x
    q, _, _ = identity_first_stage_quantize(x, vq_interface=True)
    assert q is x

    print("KERNEL_OK")
</pallas_src>

<mosaic_0001>
module attributes {stable_mosaic.version = 11 : i64} {
  func.func @_dma_copy_kernel(%arg0: memref<2x4x16x16xf32, #tpu.memory_space<any>>, %arg1: memref<2x4x16x16xf32, #tpu.memory_space<any>>, %arg2: memref<!tpu.dma_semaphore, #tpu.memory_space<semaphore_mem>>) attributes {dimension_semantics = [], scalar_prefetch = 0 : i64, scratch_operands = 1 : i64, tpu.core_type = #tpu.core_type<tc>} {
    tpu.enqueue_dma source(%arg0 : memref<2x4x16x16xf32, #tpu.memory_space<any>>) target(%arg1 : memref<2x4x16x16xf32, #tpu.memory_space<any>>) target_semaphore(%arg2 : memref<!tpu.dma_semaphore, #tpu.memory_space<semaphore_mem>>)
    tpu.wait_dma2 semaphore(%arg2 : memref<!tpu.dma_semaphore, #tpu.memory_space<semaphore_mem>>) src(%arg0 : memref<2x4x16x16xf32, #tpu.memory_space<any>>) dst(%arg1 : memref<2x4x16x16xf32, #tpu.memory_space<any>>)
    return
  }
}

</mosaic_0001>

<bundles_post_ra>
// kernel: tpu_custom_call.1
= control target key start
LH: loop header
LB: loop body
LE: loop exit
PB: predicated region body
PF: predicated region fallthrough
CT: control target
= control target key end

     0   :  { %s36_s6 = smov [#allocation2]   ;;  %s37_s7 = smov [#allocation3]   ;;  %s55_s0 = inlined_call_operand.hbm [shape: f32[2,4,16,16], index: 0, kind: input, shape index: {}]   ;;  %s56_s1 = inlined_call_operand.hbm [shape: f32[2,4,16,16], index: 1, kind: output, shape index: {}]  }
   0x1   :  { %s38_s8 = smov 0  }
   0x2   :  { %18 = dma.general %s55_s0, 2048, %s56_s1, %s36_s6, %s37_s7, [#allocation4], %s38_s8, 0  }
   0x3   :  { %34 = dma.done.wait [#allocation2], 2048 }
   0x4   :  { %35 = vsyncadd [#allocation2], 4294965248 }
   0x5   :  { %24 = vsyncmov [#allocation2] }
   0x8   :  { %s25_s13 = vpop.sfrf %24 }
   0x9   :  { %p30_p0 = scmp.ne.s32.totalorder %s25_s13, 0 }
   0xb   :  { %29 = shalt.err (%p30_p0)  }

</bundles_post_ra>
